<compile_context>
chip_gen: v5e
topology: v5e:2x2
jax: 0.10.0
libtpu: 0.0.40
codegen_flags: <defaults>
</compile_context>

<pallas_src>
import functools

import jax
import jax.numpy as jnp
from jax.experimental import pallas as pl
from jax.experimental.pallas import tpu as pltpu


def _perceptron_kernel(x_ref, w_ref, b_ref, o_ref, *, seq_len, features):
    # x_ref: (tb, S*F) VMEM (lane-dense batch tile)
    # w_ref: (1, S*F)  VMEM (resident flattened Linear weight)
    # b_ref: (1, 1)    SMEM (bias scalar)
    # o_ref: (tb, 1)   VMEM (per-row prediction)
    acc = jnp.zeros(o_ref.shape, jnp.float32)
    for s in range(seq_len):                      # static unroll over seq positions
        lo = s * features
        hi = lo + features
        xs = x_ref[:, lo:hi].astype(jnp.float32)  # (tb, F) -- loaded once per slice
        ws = w_ref[:, lo:hi].astype(jnp.float32)  # (1, F)
        dot_s = jnp.sum(xs * ws, axis=1, keepdims=True)   # (tb, 1)
        sq_s = jnp.sum(xs * xs, axis=1, keepdims=True)    # (tb, 1)
        # torch F.normalize(dim=2, eps=1e-12): x / max(||x||, 1e-12)
        #   == x * rsqrt(max(||x||^2, 1e-24)); 1e-24 is a normal f32.
        acc = acc + dot_s * jax.lax.rsqrt(jnp.maximum(sq_s, 1e-24))
    o_ref[...] = (acc + b_ref[0, 0]).astype(o_ref.dtype)


def _choose_batch_tile(batch, row_bytes, target_tile_bytes):
    tb = max(8, target_tile_bytes // row_bytes)   # ~4 MiB of x per (double-)buffer
    tb = min(tb, pl.cdiv(batch, 2))               # >= 2 grid steps when possible (v7x megacore)
    tb = max(8, (tb // 8) * 8)                    # sublane-aligned
    if tb >= 128:
        tb = (tb // 128) * 128                    # lane-friendly output / clean alignment
    if tb >= batch:
        tb = batch                                # small batch: one full tile
    return tb


def perceptron_forward(x, weight, bias, *,
                       target_tile_bytes=4 << 20,
                       vmem_limit_bytes=48 << 20):
    """x: (B, S, F) float32; weight: (1, S*F) float32 (nn.Linear weight, row-major
    over (s, f)); bias: (1, 1) float32.  Returns (B, 1) float32."""
    B, S, F = x.shape
    SF = S * F
    assert weight.shape == (1, SF)

    x2d = x.reshape(B, SF)                        # free: row-major contiguous view

    row_bytes = SF * x2d.dtype.itemsize
    tb = _choose_batch_tile(B, row_bytes, target_tile_bytes)
    num_tiles = pl.cdiv(B, tb)                    # last block may be partial (no pad copy)

    cost = pl.CostEstimate(
        flops=int(5 * B * SF),
        transcendentals=int(B * S),
        bytes_accessed=int(B * SF * 4 + SF * 4 + B * 4),
    )

    kernel = functools.partial(_perceptron_kernel, seq_len=S, features=F)

    out = pl.pallas_call(
        kernel,
        out_shape=jax.ShapeDtypeStruct((B, 1), jnp.float32),
        grid=(num_tiles,),
        in_specs=[
            pl.BlockSpec((tb, SF), lambda i: (i, 0)),   # lane-dense x batch tile
            pl.BlockSpec((1, SF), lambda i: (0, 0)),    # weight stays resident in VMEM
            pl.BlockSpec(memory_space=pltpu.SMEM),      # bias scalar
        ],
        out_specs=pl.BlockSpec((tb, 1), lambda i: (i, 0)),
        compiler_params=pltpu.CompilerParams(
            dimension_semantics=("parallel",),
            vmem_limit_bytes=vmem_limit_bytes,
        ),
        cost_estimate=cost,
    )(x2d, weight, bias)

    return out                                          # (B, 1)


def perceptron_reference(x, weight, bias):
    # Pure-JAX reference mirroring the PyTorch forward: F.normalize(dim=2, eps=1e-12),
    # Flatten, Linear(out_features=1, bias=True).
    norm = jnp.sqrt(jnp.sum(x * x, axis=2, keepdims=True))
    xn = x / jnp.maximum(norm, 1e-12)
    flat = xn.reshape(x.shape[0], -1)
    return flat @ weight.T + bias[0, 0]


if __name__ == "__main__":
    # Small shapes consistent with the module: batch=2, seq_len=8, input_size=32.
    B, S, F = 2, 8, 32
    key = jax.random.PRNGKey(0)
    kx, kw, kb = jax.random.split(key, 3)

    x = jax.random.normal(kx, (B, S, F), dtype=jnp.float32)

    # nn.Linear-style init: uniform(-1/sqrt(fan_in), 1/sqrt(fan_in)).
    fan_in = S * F
    bound = 1.0 / (fan_in ** 0.5)
    weight = jax.random.uniform(kw, (1, fan_in), minval=-bound, maxval=bound,
                                dtype=jnp.float32)
    bias = jax.random.uniform(kb, (1, 1), minval=-bound, maxval=bound,
                              dtype=jnp.float32)

    out = perceptron_forward(x, weight, bias)
    out = jax.block_until_ready(out)

    ref = perceptron_reference(x, weight, bias)
    assert out.shape == (B, 1)
    assert jnp.allclose(out, ref, atol=1e-5, rtol=1e-5)

    print("KERNEL_OK")
</pallas_src>

<mosaic_0001>
module attributes {stable_mosaic.version = 11 : i64} {
  func.func @_perceptron_kernel(%arg0: i32, %arg1: memref<2x256xf32, #tpu.memory_space<vmem>>, %arg2: memref<1x256xf32, #tpu.memory_space<vmem>>, %arg3: memref<1x1xf32, #tpu.memory_space<smem>>, %arg4: memref<2x1xf32, #tpu.memory_space<vmem>>) attributes {dimension_semantics = [#tpu.dimension_semantics<parallel>], iteration_bounds = array<i64: 1>, scalar_prefetch = 0 : i64, scratch_operands = 0 : i64, tpu.core_type = #tpu.core_type<tc>, window_params = [{transform_indices = @transform_0, window_bounds = array<i64: 2, 256>}, {pipeline_mode = #tpu.pipeline_mode<synchronous>, transform_indices = @transform_1, window_bounds = array<i64: 1, 256>}, {transform_indices = @transform_2, window_bounds = array<i64: 1, 1>}, {transform_indices = @transform_3, window_bounds = array<i64: 2, 1>}]} {
    %cst = arith.constant 0.000000e+00 : f32
    %0 = vector.broadcast %cst : f32 to vector<2x1xf32>
    %c0 = arith.constant 0 : index
    %c0_0 = arith.constant 0 : index
    %1 = vector.load %arg1[%c0, %c0_0] : memref<2x256xf32, #tpu.memory_space<vmem>>, vector<2x32xf32>
    %c0_1 = arith.constant 0 : index
    %c0_2 = arith.constant 0 : index
    %2 = vector.load %arg2[%c0_1, %c0_2] : memref<1x256xf32, #tpu.memory_space<vmem>>, vector<1x32xf32>
    %3 = vector.broadcast %2 : vector<1x32xf32> to vector<2x32xf32>
    %4 = arith.mulf %1, %3 : vector<2x32xf32>
    %cst_3 = arith.constant dense<0.000000e+00> : vector<2xf32>
    %5 = vector.multi_reduction <add>, %4, %cst_3 [1] : vector<2x32xf32> to vector<2xf32>
    %6 = vector.shape_cast %5 : vector<2xf32> to vector<2x1xf32>
    %7 = arith.mulf %1, %1 : vector<2x32xf32>
    %cst_4 = arith.constant dense<0.000000e+00> : vector<2xf32>
    %8 = vector.multi_reduction <add>, %7, %cst_4 [1] : vector<2x32xf32> to vector<2xf32>
    %9 = vector.shape_cast %8 : vector<2xf32> to vector<2x1xf32>
    %cst_5 = arith.constant 1.000000e-24 : f32
    %10 = vector.broadcast %cst_5 : f32 to vector<2x1xf32>
    %11 = arith.maximumf %9, %10 : vector<2x1xf32>
    %12 = math.rsqrt %11 : vector<2x1xf32>
    %13 = arith.mulf %6, %12 : vector<2x1xf32>
    %14 = arith.addf %0, %13 : vector<2x1xf32>
    %c0_6 = arith.constant 0 : index
    %c32 = arith.constant 32 : index
    %15 = vector.load %arg1[%c0_6, %c32] : memref<2x256xf32, #tpu.memory_space<vmem>>, vector<2x32xf32>
    %c0_7 = arith.constant 0 : index
    %c32_8 = arith.constant 32 : index
    %16 = vector.load %arg2[%c0_7, %c32_8] : memref<1x256xf32, #tpu.memory_space<vmem>>, vector<1x32xf32>
    %17 = vector.broadcast %16 : vector<1x32xf32> to vector<2x32xf32>
    %18 = arith.mulf %15, %17 : vector<2x32xf32>
    %cst_9 = arith.constant dense<0.000000e+00> : vector<2xf32>
    %19 = vector.multi_reduction <add>, %18, %cst_9 [1] : vector<2x32xf32> to vector<2xf32>
    %20 = vector.shape_cast %19 : vector<2xf32> to vector<2x1xf32>
    %21 = arith.mulf %15, %15 : vector<2x32xf32>
    %cst_10 = arith.constant dense<0.000000e+00> : vector<2xf32>
    %22 = vector.multi_reduction <add>, %21, %cst_10 [1] : vector<2x32xf32> to vector<2xf32>
    %23 = vector.shape_cast %22 : vector<2xf32> to vector<2x1xf32>
    %cst_11 = arith.constant 1.000000e-24 : f32
    %24 = vector.broadcast %cst_11 : f32 to vector<2x1xf32>
    %25 = arith.maximumf %23, %24 : vector<2x1xf32>
    %26 = math.rsqrt %25 : vector<2x1xf32>
    %27 = arith.mulf %20, %26 : vector<2x1xf32>
    %28 = arith.addf %14, %27 : vector<2x1xf32>
    %c0_12 = arith.constant 0 : index
    %c64 = arith.constant 64 : index
    %29 = vector.load %arg1[%c0_12, %c64] : memref<2x256xf32, #tpu.memory_space<vmem>>, vector<2x32xf32>
    %c0_13 = arith.constant 0 : index
    %c64_14 = arith.constant 64 : index
    %30 = vector.load %arg2[%c0_13, %c64_14] : memref<1x256xf32, #tpu.memory_space<vmem>>, vector<1x32xf32>
    %31 = vector.broadcast %30 : vector<1x32xf32> to vector<2x32xf32>
    %32 = arith.mulf %29, %31 : vector<2x32xf32>
    %cst_15 = arith.constant dense<0.000000e+00> : vector<2xf32>
    %33 = vector.multi_reduction <add>, %32, %cst_15 [1] : vector<2x32xf32> to vector<2xf32>
    %34 = vector.shape_cast %33 : vector<2xf32> to vector<2x1xf32>
    %35 = arith.mulf %29, %29 : vector<2x32xf32>
    %cst_16 = arith.constant dense<0.000000e+00> : vector<2xf32>
    %36 = vector.multi_reduction <add>, %35, %cst_16 [1] : vector<2x32xf32> to vector<2xf32>
    %37 = vector.shape_cast %36 : vector<2xf32> to vector<2x1xf32>
    %cst_17 = arith.constant 1.000000e-24 : f32
    %38 = vector.broadcast %cst_17 : f32 to vector<2x1xf32>
    %39 = arith.maximumf %37, %38 : vector<2x1xf32>
    %40 = math.rsqrt %39 : vector<2x1xf32>
    %41 = arith.mulf %34, %40 : vector<2x1xf32>
    %42 = arith.addf %28, %41 : vector<2x1xf32>
    %c0_18 = arith.constant 0 : index
    %c96 = arith.constant 96 : index
    %43 = vector.load %arg1[%c0_18, %c96] : memref<2x256xf32, #tpu.memory_space<vmem>>, vector<2x32xf32>
    %c0_19 = arith.constant 0 : index
    %c96_20 = arith.constant 96 : index
    %44 = vector.load %arg2[%c0_19, %c96_20] : memref<1x256xf32, #tpu.memory_space<vmem>>, vector<1x32xf32>
    %45 = vector.broadcast %44 : vector<1x32xf32> to vector<2x32xf32>
    %46 = arith.mulf %43, %45 : vector<2x32xf32>
    %cst_21 = arith.constant dense<0.000000e+00> : vector<2xf32>
    %47 = vector.multi_reduction <add>, %46, %cst_21 [1] : vector<2x32xf32> to vector<2xf32>
    %48 = vector.shape_cast %47 : vector<2xf32> to vector<2x1xf32>
    %49 = arith.mulf %43, %43 : vector<2x32xf32>
    %cst_22 = arith.constant dense<0.000000e+00> : vector<2xf32>
    %50 = vector.multi_reduction <add>, %49, %cst_22 [1] : vector<2x32xf32> to vector<2xf32>
    %51 = vector.shape_cast %50 : vector<2xf32> to vector<2x1xf32>
    %cst_23 = arith.constant 1.000000e-24 : f32
    %52 = vector.broadcast %cst_23 : f32 to vector<2x1xf32>
    %53 = arith.maximumf %51, %52 : vector<2x1xf32>
    %54 = math.rsqrt %53 : vector<2x1xf32>
    %55 = arith.mulf %48, %54 : vector<2x1xf32>
    %56 = arith.addf %42, %55 : vector<2x1xf32>
    %c0_24 = arith.constant 0 : index
    %c128 = arith.constant 128 : index
    %57 = vector.load %arg1[%c0_24, %c128] : memref<2x256xf32, #tpu.memory_space<vmem>>, vector<2x32xf32>
    %c0_25 = arith.constant 0 : index
    %c128_26 = arith.constant 128 : index
    %58 = vector.load %arg2[%c0_25, %c128_26] : memref<1x256xf32, #tpu.memory_space<vmem>>, vector<1x32xf32>
    %59 = vector.broadcast %58 : vector<1x32xf32> to vector<2x32xf32>
    %60 = arith.mulf %57, %59 : vector<2x32xf32>
    %cst_27 = arith.constant dense<0.000000e+00> : vector<2xf32>
    %61 = vector.multi_reduction <add>, %60, %cst_27 [1] : vector<2x32xf32> to vector<2xf32>
    %62 = vector.shape_cast %61 : vector<2xf32> to vector<2x1xf32>
    %63 = arith.mulf %57, %57 : vector<2x32xf32>
    %cst_28 = arith.constant dense<0.000000e+00> : vector<2xf32>
    %64 = vector.multi_reduction <add>, %63, %cst_28 [1] : vector<2x32xf32> to vector<2xf32>
    %65 = vector.shape_cast %64 : vector<2xf32> to vector<2x1xf32>
    %cst_29 = arith.constant 1.000000e-24 : f32
    %66 = vector.broadcast %cst_29 : f32 to vector<2x1xf32>
    %67 = arith.maximumf %65, %66 : vector<2x1xf32>
    %68 = math.rsqrt %67 : vector<2x1xf32>
    %69 = arith.mulf %62, %68 : vector<2x1xf32>
    %70 = arith.addf %56, %69 : vector<2x1xf32>
    %c0_30 = arith.constant 0 : index
    %c160 = arith.constant 160 : index
    %71 = vector.load %arg1[%c0_30, %c160] : memref<2x256xf32, #tpu.memory_space<vmem>>, vector<2x32xf32>
    %c0_31 = arith.constant 0 : index
    %c160_32 = arith.constant 160 : index
    %72 = vector.load %arg2[%c0_31, %c160_32] : memref<1x256xf32, #tpu.memory_space<vmem>>, vector<1x32xf32>
    %73 = vector.broadcast %72 : vector<1x32xf32> to vector<2x32xf32>
    %74 = arith.mulf %71, %73 : vector<2x32xf32>
    %cst_33 = arith.constant dense<0.000000e+00> : vector<2xf32>
    %75 = vector.multi_reduction <add>, %74, %cst_33 [1] : vector<2x32xf32> to vector<2xf32>
    %76 = vector.shape_cast %75 : vector<2xf32> to vector<2x1xf32>
    %77 = arith.mulf %71, %71 : vector<2x32xf32>
    %cst_34 = arith.constant dense<0.000000e+00> : vector<2xf32>
    %78 = vector.multi_reduction <add>, %77, %cst_34 [1] : vector<2x32xf32> to vector<2xf32>
    %79 = vector.shape_cast %78 : vector<2xf32> to vector<2x1xf32>
    %cst_35 = arith.constant 1.000000e-24 : f32
    %80 = vector.broadcast %cst_35 : f32 to vector<2x1xf32>
    %81 = arith.maximumf %79, %80 : vector<2x1xf32>
    %82 = math.rsqrt %81 : vector<2x1xf32>
    %83 = arith.mulf %76, %82 : vector<2x1xf32>
    %84 = arith.addf %70, %83 : vector<2x1xf32>
    %c0_36 = arith.constant 0 : index
    %c192 = arith.constant 192 : index
    %85 = vector.load %arg1[%c0_36, %c192] : memref<2x256xf32, #tpu.memory_space<vmem>>, vector<2x32xf32>
    %c0_37 = arith.constant 0 : index
    %c192_38 = arith.constant 192 : index
    %86 = vector.load %arg2[%c0_37, %c192_38] : memref<1x256xf32, #tpu.memory_space<vmem>>, vector<1x32xf32>
    %87 = vector.broadcast %86 : vector<1x32xf32> to vector<2x32xf32>
    %88 = arith.mulf %85, %87 : vector<2x32xf32>
    %cst_39 = arith.constant dense<0.000000e+00> : vector<2xf32>
    %89 = vector.multi_reduction <add>, %88, %cst_39 [1] : vector<2x32xf32> to vector<2xf32>
    %90 = vector.shape_cast %89 : vector<2xf32> to vector<2x1xf32>
    %91 = arith.mulf %85, %85 : vector<2x32xf32>
    %cst_40 = arith.constant dense<0.000000e+00> : vector<2xf32>
    %92 = vector.multi_reduction <add>, %91, %cst_40 [1] : vector<2x32xf32> to vector<2xf32>
    %93 = vector.shape_cast %92 : vector<2xf32> to vector<2x1xf32>
    %cst_41 = arith.constant 1.000000e-24 : f32
    %94 = vector.broadcast %cst_41 : f32 to vector<2x1xf32>
    %95 = arith.maximumf %93, %94 : vector<2x1xf32>
    %96 = math.rsqrt %95 : vector<2x1xf32>
    %97 = arith.mulf %90, %96 : vector<2x1xf32>
    %98 = arith.addf %84, %97 : vector<2x1xf32>
    %c0_42 = arith.constant 0 : index
    %c224 = arith.constant 224 : index
    %99 = vector.load %arg1[%c0_42, %c224] : memref<2x256xf32, #tpu.memory_space<vmem>>, vector<2x32xf32>
    %c0_43 = arith.constant 0 : index
    %c224_44 = arith.constant 224 : index
    %100 = vector.load %arg2[%c0_43, %c224_44] : memref<1x256xf32, #tpu.memory_space<vmem>>, vector<1x32xf32>
    %101 = vector.broadcast %100 : vector<1x32xf32> to vector<2x32xf32>
    %102 = arith.mulf %99, %101 : vector<2x32xf32>
    %cst_45 = arith.constant dense<0.000000e+00> : vector<2xf32>
    %103 = vector.multi_reduction <add>, %102, %cst_45 [1] : vector<2x32xf32> to vector<2xf32>
    %104 = vector.shape_cast %103 : vector<2xf32> to vector<2x1xf32>
    %105 = arith.mulf %99, %99 : vector<2x32xf32>
    %cst_46 = arith.constant dense<0.000000e+00> : vector<2xf32>
    %106 = vector.multi_reduction <add>, %105, %cst_46 [1] : vector<2x32xf32> to vector<2xf32>
    %107 = vector.shape_cast %106 : vector<2xf32> to vector<2x1xf32>
    %cst_47 = arith.constant 1.000000e-24 : f32
    %108 = vector.broadcast %cst_47 : f32 to vector<2x1xf32>
    %109 = arith.maximumf %107, %108 : vector<2x1xf32>
    %110 = math.rsqrt %109 : vector<2x1xf32>
    %111 = arith.mulf %104, %110 : vector<2x1xf32>
    %112 = arith.addf %98, %111 : vector<2x1xf32>
    %c0_48 = arith.constant 0 : index
    %c0_49 = arith.constant 0 : index
    %113 = memref.load %arg3[%c0_48, %c0_49] : memref<1x1xf32, #tpu.memory_space<smem>>
    %114 = vector.broadcast %113 : f32 to vector<2x1xf32>
    %115 = arith.addf %112, %114 : vector<2x1xf32>
    %c0_50 = arith.constant 0 : index
    %c0_51 = arith.constant 0 : index
    %116 = vector.load %arg4[%c0_50, %c0_51] : memref<2x1xf32, #tpu.memory_space<vmem>>, vector<2x1xf32>
    tpu.vector_store %arg4[%c0_50, %c0_51], %115 {strides = array<i32>} : memref<2x1xf32, #tpu.memory_space<vmem>>, vector<2x1xf32>,
    return
  }
  func.func @transform_0(%arg0: i32) -> (i32, i32) {
    %c0_i32 = arith.constant 0 : i32
    %c0_i32_0 = arith.constant 0 : i32
    return %arg0, %c0_i32 : i32, i32
  }
  func.func @transform_1(%arg0: i32) -> (i32, i32) {
    %c0_i32 = arith.constant 0 : i32
    %c0_i32_0 = arith.constant 0 : i32
    %c0_i32_1 = arith.constant 0 : i32
    return %c0_i32, %c0_i32_0 : i32, i32
  }
  func.func @transform_2(%arg0: i32) -> (i32, i32) {
    %c0_i32 = arith.constant 0 : i32
    %c0_i32_0 = arith.constant 0 : i32
    %c0_i32_1 = arith.constant 0 : i32
    return %c0_i32, %c0_i32_0 : i32, i32
  }
  func.func @transform_3(%arg0: i32) -> (i32, i32) {
    %c0_i32 = arith.constant 0 : i32
    %c0_i32_0 = arith.constant 0 : i32
    return %arg0, %c0_i32 : i32, i32
  }
}

</mosaic_0001>

<bundles_post_ra>
// kernel: tpu_custom_call.1
= control target key start
LH: loop header
LB: loop body
LE: loop exit
PB: predicated region body
PF: predicated region fallthrough
CT: control target
= control target key end

     0   :  { %9 = vsyncpa [#allocation4], 0  ;;  %s358_s15 = smov [#allocation3]   ;;  %s443_s0 = inlined_call_operand.hbm [shape: f32[2,256], index: 0, kind: input, shape index: {}]   ;;  %s444_s1 = inlined_call_operand.vmem [shape: f32[1,256], index: 1, kind: input, shape index: {}]   ;;  %s445_s2 = inlined_call_operand.<no memory space> [shape: f32[1,1], index: 2, kind: input, shape index: {}]   ;;  %s446_s3 = inlined_call_operand.vmem [shape: f32[2,1], index: 3, kind: output, shape index: {}]  }
   0x1   :  { %s15_s14 = sshll.u32 %s443_s0, 4  ;;  %s17_s16 = sshll.u32 %s358_s15, 4  ;;  %s16_s14 = int_to_ptr.hbm [resolvable:$true] %s15_s14  ;;  %s18_s16 = int_to_ptr.vmem [resolvable:$true] %s17_s16 }
   0x2   :  { %20 = dma.hbm_to_vmem [thread:$0]  %s16_s14, 64, %s18_s16, [#allocation4]  }
   0x3   :  { %356 = dma.done.wait [#allocation4], 64  }
   0x4   :  { %357 = vsyncadd [#allocation4], 4294967232  ;;  %vm35_vm0 = vcmask 254976   ;;  %v29_v0 = vld [vmem:[#allocation3] sm:$0x3]  ;;  %s359_s20 = smov 96  }
   0x5   :  { %v310_v1 = vld [vmem:[%s444_s1] ss:$0 sm:$0xff]  ;;  %v39_v2 = vmul.f32 %v29_v0, %v29_v0  ;;  %v87_v8 = vld [vmem:[#allocation3] sm:$0x3]  ;;  %s360_s23 = smov 64   ;;  %s361_s26 = smov 32  }
   0x6   :  { %v34_v3 = vmul.f32 %v310_v1, %v29_v0  ;;  %v311_v7 = vld [vmem:[%s444_s1] ss:$0 sm:$0xff]  ;;  %v102_v11 = vmul.f32 %v87_v8, %v87_v8  ;;  %v125_v14 = vld [vmem:[#allocation3] sm:$0x3]  ;;  %v313_v19 = vld [vmem:[%s444_s1 + $0x1] ss:$0 sm:$0xff] }
   0x7   :  { %v40_v4 = vsel %vm35_vm0, %v39_v2, 0.0  ;;  %v92_v9 = vmul.f32 %v311_v7, %v87_v8  ;;  %v312_v13 = vld [vmem:[%s444_s1] ss:$0 sm:$0xff]  ;;  %v140_v17 = vmul.f32 %v125_v14, %v125_v14  ;;  %v163_v20 = vld [vmem:[#allocation3 + $0x2] sm:$0x3] }
   0x8   :  { %41 = vadd.xlane.f32.xlu0 %v40_v4  ;;  %57 = vst [vmem:[#allocation1] ss:$4 sm:$0xff] %v34_v3  ;;  %v36_v5 = vsel %vm35_vm0, %v34_v3, 0.0  ;;  %v130_v15 = vmul.f32 %v312_v13, %v125_v14  ;;  %v168_v21 = vmul.f32 %v313_v19, %v163_v20  ;;  %v172_v23 = vmul.f32 %v163_v20, %v163_v20  ;;  %v314_v25 = vld [vmem:[%s444_s1 + $0x1] ss:$0 sm:$0xff] }
   0x9   :  { %v220_v26 = vld [vmem:[#allocation3 + $0x2] sm:$0x3]  ;;  %v315_v32 = vld [vmem:[%s444_s1 + $0x1] ss:$0 sm:$0xff] }
   0xa   :  { %v225_v27 = vmul.f32 %v314_v25, %v220_v26  ;;  %v235_v29 = vmul.f32 %v220_v26, %v220_v26  ;;  %v173_v30 = vsel %vm35_vm0, %v172_v23, 0.0  ;;  %v258_v33 = vld [vmem:[#allocation3 + $0x2] sm:$0x3]  ;;  %v169_v38 = vsel %vm35_vm0, %v168_v21, 0.0 }
   0xb   :  { %v263_v34 = vmul.f32 %v315_v32, %v258_v33  ;;  %v273_v36 = vmul.f32 %v258_v33, %v258_v33 }
   0xf   :  { %v58_v6 = vld.sshfl [vmem:[#allocation1] sm:$0xff pattern:$0x73625140] }
  0x10   :  { %66 = vst [vmem:[#allocation1] ss:$4 sm:$0xff] %v39_v2  ;;  %59 = vrot.lane.b32.xlu1 %v58_v6, %s359_s20  ;;  %37 = vadd.xlane.f32.xlu0 %v36_v5 }
  0x17   :  { %v67_v10 = vld.sshfl [vmem:[#allocation1] sm:$0xff pattern:$0x73625140] }
  0x18   :  { %94 = vst [vmem:[#allocation1] ss:$4 sm:$0xff] %v92_v9  ;;  %68 = vrot.lane.b32.xlu2 %v67_v10, %s359_s20 }
  0x1f   :  { %v95_v12 = vld.sshfl [vmem:[#allocation1] sm:$0xff pattern:$0x73625140] }
  0x20   :  { %104 = vst [vmem:[#allocation1] ss:$4 sm:$0xff] %v102_v11 }
  0x24   :  { %96 = vrot.lane.b32.xlu0 %v95_v12, %s360_s23 }
  0x27   :  { %v105_v16 = vld.sshfl [vmem:[#allocation1] sm:$0xff pattern:$0x73625140] }
  0x28   :  { %106 = vrot.lane.b32.xlu2 %v105_v16, %s360_s23  ;;  %132 = vst [vmem:[#allocation1] ss:$4 sm:$0xff] %v130_v15 }
  0x2f   :  { %v133_v18 = vld.sshfl [vmem:[#allocation1] sm:$0xff pattern:$0x73625140] }
  0x30   :  { %142 = vst [vmem:[#allocation1] ss:$4 sm:$0xff] %v140_v17  ;;  %134 = vrot.lane.b32.xlu1 %v133_v18, %s361_s26 }
  0x37   :  { %v143_v22 = vld.sshfl [vmem:[#allocation1] sm:$0xff pattern:$0x73625140] }
  0x38   :  { %190 = vst [vmem:[#allocation1] ss:$4 sm:$0xff] %v168_v21  ;;  %144 = vrot.lane.b32.xlu0 %v143_v22, %s361_s26 }
  0x3f   :  { %v191_v24 = vld.sshfl [vmem:[#allocation1] sm:$0xff pattern:$0x73625140] }
  0x40   :  { %199 = vst [vmem:[#allocation1] ss:$4 sm:$0xff] %v172_v23 }
  0x47   :  { %v200_v28 = vld.sshfl [vmem:[#allocation1] sm:$0xff pattern:$0x73625140] }
  0x48   :  { %201 = vrot.lane.b32.xlu1 %v200_v28, %s359_s20  ;;  %227 = vst [vmem:[#allocation1] ss:$4 sm:$0xff] %v225_v27 }
  0x4f   :  { %v410_v31 = vld.sshfl [vmem:[#allocation1] sm:$0xff pattern:$0x73625140] }
  0x50   :  { %237 = vst [vmem:[#allocation1] ss:$4 sm:$0xff] %v235_v29 }
  0x51   :  { %174 = vadd.xlane.f32.xlu2 %v173_v30 }
  0x57   :  { %v238_v35 = vld.sshfl [vmem:[#allocation1] sm:$0xff pattern:$0x73625140] }
  0x58   :  { %265 = vst [vmem:[#allocation1] ss:$4 sm:$0xff] %v263_v34 }
  0x5f   :  { %v266_v37 = vld.sshfl [vmem:[#allocation1] sm:$0xff pattern:$0x73625140] }
  0x60   :  { %275 = vst [vmem:[#allocation1] ss:$4 sm:$0xff] %v273_v36 }
  0x62   :  { %170 = vadd.xlane.f32.xlu0 %v169_v38 }
  0x67   :  { %v276_v39 = vld.sshfl [vmem:[#allocation1] sm:$0xff pattern:$0x73625140] }
  0x69   :  { %192 = vrot.lane.b32.xlu2 %v191_v24, %s359_s20 }
  0x71   :  { %277 = vrot.lane.b32.xlu2 %v276_v39, %s361_s26 }
  0x72   :  { %v69_v42 = vpop.permute.xlu2 %68 }
  0x73   :  { %v71_v56 = vsel %vm35_vm0, %v69_v42, 0.0 }
  0x76   :  { %239 = vrot.lane.b32.xlu0 %v238_v35, %s360_s23 }
  0x7b   :  { %v42_v40 = vpop.xlane.xlu0 %41 }
  0x7c   :  { %v43_v41 = vmax.f32 %v42_v40, 1e-24 }
  0x7e   :  { %316 = vrsqrt.f32 %v43_v41  ;;  %vm50_vm1 = vweird.f32 %v43_v41 }
  0x82   :  { %v60_v43 = vpop.permute.xlu1 %59  ;;  %v107_v48 = vpop.permute.xlu2 %106 }
  0x83   :  { %v62_v44 = vsel %vm35_vm0, %v60_v43, 0.0  ;;  %v109_v50 = vsel %vm35_vm0, %v107_v48, 0.0  ;;  %v38_v54 = vpop.xlane.xlu0 %37 }
  0x84   :  { %v317_v45 = vpop.eup %316  ;;  %63 = vadd.xlane.f32.xlu1 %v62_v44 }
  0x85   :  { %v45_v46 = vmul.f32 %v317_v45, %v43_v41  ;;  %vm51_vm2 = vweird.f32 %v317_v45 }
  0x86   :  { %vm52_vm3 = vmor %vm50_vm1, %vm51_vm2 }
  0x87   :  { %v46_v47 = vmul.f32 %v317_v45, %v45_v46 }
  0x89   :  { %v47_v49 = vmul.f32 0.5, %v46_v47 }
  0x8b   :  { %v48_v51 = vsub.f32 1.5, %v47_v49 }
  0x8c   :  { %110 = vadd.xlane.f32.xlu1 %v109_v50 }
  0x8d   :  { %v49_v52 = vmul.f32 %v317_v45, %v48_v51 }
  0x8f   :  { %v53_v53 = vsel %vm52_vm3, %v317_v45, %v49_v52 }
  0x90   :  { %v421_v55 = vmul.f32 %v53_v53, %v38_v54 }
  0x96   :  { %v97_v57 = vpop.permute.xlu0 %96 }
  0x97   :  { %v99_v58 = vsel %vm35_vm0, %v97_v57, 0.0 }
  0x9a   :  { %72 = vadd.xlane.f32.xlu2 %v71_v56 }
  0xa0   :  { %100 = vadd.xlane.f32.xlu0 %v99_v58 }
  0xa2   :  { %v135_v59 = vpop.permute.xlu1 %134 }
  0xa3   :  { %v137_v60 = vsel %vm35_vm0, %v135_v59, 0.0 }
  0xa4   :  { %138 = vadd.xlane.f32.xlu2 %v137_v60 }
  0xaa   :  { %v145_v61 = vpop.permute.xlu0 %144 }
  0xab   :  { %v147_v62 = vsel %vm35_vm0, %v145_v61, 0.0 }
  0xac   :  { %148 = vadd.xlane.f32.xlu1 %v147_v62 }
  0xb4   :  { %267 = vrot.lane.b32.xlu0 %v266_v37, %s361_s26 }
  0xba   :  { %v202_v63 = vpop.permute.xlu1 %201 }
  0xbb   :  { %v204_v0 = vsel %vm35_vm0, %v202_v63, 0.0 }
  0xbc   :  { %205 = vadd.xlane.f32.xlu2 %v204_v0 }
  0xc4   :  { %v175_v1 = vpop.xlane.xlu2 %174 }
  0xc5   :  { %v176_v2 = vmax.f32 %v175_v1, 1e-24 }
  0xc7   :  { %318 = vrsqrt.f32 %v176_v2  ;;  %vm183_vm5 = vweird.f32 %v176_v2 }
  0xcc   :  { %v193_v3 = vpop.permute.xlu2 %192 }
  0xcd   :  { %v319_v4 = vpop.eup %318  ;;  %v195_v5 = vsel %vm35_vm0, %v193_v3, 0.0 }
  0xce   :  { %v178_v6 = vmul.f32 %v319_v4, %v176_v2  ;;  %196 = vadd.xlane.f32.xlu1 %v195_v5  ;;  %vm184_vm4 = vweird.f32 %v319_v4 }
  0xcf   :  { %vm185_vm6 = vmor %vm183_vm5, %vm184_vm4 }
  0xd0   :  { %v179_v7 = vmul.f32 %v319_v4, %v178_v6 }
  0xd2   :  { %v180_v8 = vmul.f32 0.5, %v179_v7 }
  0xd4   :  { %v181_v9 = vsub.f32 1.5, %v180_v8  ;;  %v278_v17 = vpop.permute.xlu2 %277 }
  0xd5   :  { %v171_v11 = vpop.xlane.xlu0 %170  ;;  %v280_v36 = vsel %vm35_vm0, %v278_v17, 0.0 }
  0xd6   :  { %v182_v10 = vmul.f32 %v319_v4, %v181_v9 }
  0xd8   :  { %v186_v12 = vsel %vm185_vm6, %v319_v4, %v182_v10 }
  0xd9   :  { %v187_v13 = vmul.f32 %v186_v12, %v171_v11 }
  0xde   :  { %281 = vadd.xlane.f32.xlu0 %v280_v36 }
  0xe7   :  { %229 = vrot.lane.b32.xlu1 %v410_v31, %s360_s23 }
  0xe8   :  { %v240_v20 = vpop.permute.xlu0 %239 }
  0xe9   :  { %v242_v25 = vsel %vm35_vm0, %v240_v20, 0.0 }
  0xf7   :  { %v64_v14 = vpop.xlane.xlu1 %63 }
  0xff   :  { %v111_v15 = vpop.xlane.xlu1 %110 }
 0x100   :  { %v112_v16 = vmax.f32 %v111_v15, 1e-24 }
 0x102   :  { %320 = vrsqrt.f32 %v112_v16  ;;  %vm119_vm8 = vweird.f32 %v112_v16 }
 0x108   :  { %v321_v18 = vpop.eup %320 }
 0x109   :  { %v114_v19 = vmul.f32 %v321_v18, %v112_v16  ;;  %vm120_vm7 = vweird.f32 %v321_v18 }
 0x10a   :  { %vm121_vm9 = vmor %vm119_vm8, %vm120_vm7 }
 0x10b   :  { %v115_v21 = vmul.f32 %v321_v18, %v114_v19 }
 0x10d   :  { %v116_v22 = vmul.f32 0.5, %v115_v21  ;;  %v73_v23 = vpop.xlane.xlu2 %72 }
 0x10e   :  { %v74_v24 = vmax.f32 %v73_v23, 1e-24 }
 0x10f   :  { %v117_v26 = vsub.f32 1.5, %v116_v22 }
 0x110   :  { %322 = vrsqrt.f32 %v74_v24  ;;  %vm81_vm11 = vweird.f32 %v74_v24 }
 0x111   :  { %v118_v27 = vmul.f32 %v321_v18, %v117_v26  ;;  %243 = vadd.xlane.f32.xlu1 %v242_v25 }
 0x113   :  { %v122_v28 = vsel %vm121_vm9, %v321_v18, %v118_v27  ;;  %v101_v29 = vpop.xlane.xlu0 %100  ;;  %vm299_vm9 = vcmask 1024  }
 0x114   :  { %v123_v30 = vmul.f32 %v122_v28, %v101_v29 }
 0x116   :  { %v323_v31 = vpop.eup %322 }
 0x117   :  { %v76_v32 = vmul.f32 %v323_v31, %v74_v24  ;;  %vm82_vm10 = vweird.f32 %v323_v31  ;;  %v139_v43 = vpop.xlane.xlu2 %138 }
 0x118   :  { %vm83_vm12 = vmor %vm81_vm11, %vm82_vm10 }
 0x119   :  { %v77_v33 = vmul.f32 %v323_v31, %v76_v32 }
 0x11b   :  { %v78_v34 = vmul.f32 0.5, %v77_v33 }
 0x11d   :  { %v79_v35 = vsub.f32 1.5, %v78_v34 }
 0x11f   :  { %v80_v37 = vmul.f32 %v323_v31, %v79_v35  ;;  %v149_v38 = vpop.xlane.xlu1 %148 }
 0x120   :  { %v150_v39 = vmax.f32 %v149_v38, 1e-24 }
 0x121   :  { %v84_v40 = vsel %vm83_vm12, %v323_v31, %v80_v37 }
 0x122   :  { %v85_v41 = vmul.f32 %v84_v40, %v64_v14  ;;  %324 = vrsqrt.f32 %v150_v39  ;;  %vm157_vm13 = vweird.f32 %v150_v39 }
 0x124   :  { %v86_v42 = vadd.f32 %v85_v41, %v421_v55 }
 0x126   :  { %v124_v44 = vadd.f32 %v123_v30, %v86_v42  ;;  %v268_v5 = vpop.permute.xlu0 %267  ;;  %v297_v30 = vstv %s445_s2 }
 0x127   :  { %v270_v6 = vsel %vm35_vm0, %v268_v5, 0.0 }
 0x128   :  { %v325_v45 = vpop.eup %324 }
 0x129   :  { %v152_v46 = vmul.f32 %v325_v45, %v150_v39  ;;  %vm158_vm14 = vweird.f32 %v325_v45 }
 0x12a   :  { %vm159_vm15 = vmor %vm157_vm13, %vm158_vm14 }
 0x12b   :  { %v153_v47 = vmul.f32 %v325_v45, %v152_v46 }
 0x12d   :  { %v154_v48 = vmul.f32 0.5, %v153_v47 }
 0x12f   :  { %v155_v49 = vsub.f32 1.5, %v154_v48  ;;  %v206_v50 = vpop.xlane.xlu2 %205 }
 0x130   :  { %v207_v51 = vmax.f32 %v206_v50, 1e-24 }
 0x131   :  { %v156_v52 = vmul.f32 %v325_v45, %v155_v49 }
 0x132   :  { %326 = vrsqrt.f32 %v207_v51  ;;  %vm214_vm1 = vweird.f32 %v207_v51 }
 0x133   :  { %v160_v53 = vsel %vm159_vm15, %v325_v45, %v156_v52 }
 0x134   :  { %v161_v54 = vmul.f32 %v160_v53, %v139_v43 }
 0x136   :  { %v162_v56 = vadd.f32 %v161_v54, %v124_v44 }
 0x138   :  { %v327_v57 = vpop.eup %326  ;;  %v188_v58 = vadd.f32 %v187_v13, %v162_v56 }
 0x139   :  { %v209_v55 = vmul.f32 %v327_v57, %v207_v51  ;;  %vm215_vm2 = vweird.f32 %v327_v57 }
 0x13a   :  { %vm216_vm3 = vmor %vm214_vm1, %vm215_vm2 }
 0x13b   :  { %v210_v59 = vmul.f32 %v327_v57, %v209_v55 }
 0x13d   :  { %v211_v60 = vmul.f32 0.5, %v210_v59 }
 0x13f   :  { %v212_v61 = vsub.f32 1.5, %v211_v60 }
 0x141   :  { %v213_v62 = vmul.f32 %v327_v57, %v212_v61  ;;  %v197_v0 = vpop.xlane.xlu1 %196 }
 0x143   :  { %v217_v63 = vsel %vm216_vm3, %v327_v57, %v213_v62 }
 0x144   :  { %v218_v1 = vmul.f32 %v217_v63, %v197_v0 }
 0x146   :  { %v219_v2 = vadd.f32 %v218_v1, %v188_v58 }
 0x151   :  { %v282_v9 = vpop.xlane.xlu0 %281 }
 0x152   :  { %v283_v10 = vmax.f32 %v282_v9, 1e-24 }
 0x154   :  { %vm290_vm6 = vweird.f32 %v283_v10 }
 0x159   :  { %v230_v3 = vpop.permute.xlu1 %229 }
 0x15a   :  { %v232_v4 = vsel %vm35_vm0, %v230_v3, 0.0 }
 0x15b   :  { %233 = vadd.xlane.f32.xlu2 %v232_v4 }
 0x163   :  { %271 = vadd.xlane.f32.xlu2 %v270_v6 }
 0x184   :  { %v244_v7 = vpop.xlane.xlu1 %243 }
 0x185   :  { %v245_v8 = vmax.f32 %v244_v7, 1e-24 }
 0x187   :  { %328 = vrsqrt.f32 %v245_v8  ;;  %vm252_vm4 = vweird.f32 %v245_v8 }
 0x188   :  { %330 = vrsqrt.f32 %v283_v10 }
 0x18d   :  { %v329_v11 = vpop.eup %328 }
 0x18e   :  { %v247_v12 = vmul.f32 %v329_v11, %v245_v8  ;;  %v331_v13 = vpop.eup %330  ;;  %vm253_vm5 = vweird.f32 %v329_v11 }
 0x18f   :  { %v285_v15 = vmul.f32 %v331_v13, %v283_v10  ;;  %vm254_vm0 = vmor %vm252_vm4, %vm253_vm5  ;;  %vm291_vm7 = vweird.f32 %v331_v13 }
 0x190   :  { %v248_v14 = vmul.f32 %v329_v11, %v247_v12  ;;  %vm292_vm8 = vmor %vm290_vm6, %vm291_vm7 }
 0x191   :  { %v286_v17 = vmul.f32 %v331_v13, %v285_v15 }
 0x192   :  { %v249_v16 = vmul.f32 0.5, %v248_v14 }
 0x193   :  { %v287_v19 = vmul.f32 0.5, %v286_v17 }
 0x194   :  { %v250_v18 = vsub.f32 1.5, %v249_v16 }
 0x195   :  { %v288_v20 = vsub.f32 1.5, %v287_v19 }
 0x196   :  { %v251_v22 = vmul.f32 %v329_v11, %v250_v18 }
 0x197   :  { %v289_v24 = vmul.f32 %v331_v13, %v288_v20 }
 0x198   :  { %v255_v23 = vsel %vm254_vm0, %v329_v11, %v251_v22 }
 0x199   :  { %v293_v27 = vsel %vm292_vm8, %v331_v13, %v289_v24 }
 0x1ce   :  { %v234_v21 = vpop.xlane.xlu2 %233 }
 0x1cf   :  { %v256_v25 = vmul.f32 %v255_v23, %v234_v21 }
 0x1d1   :  { %v257_v28 = vadd.f32 %v256_v25, %v219_v2 }
 0x1d6   :  { %v272_v26 = vpop.xlane.xlu2 %271 }
 0x1d7   :  { %v294_v29 = vmul.f32 %v293_v27, %v272_v26 }
 0x1d9   :  { %v295_v31 = vadd.f32 %v294_v29, %v257_v28 }
 0x1db   :  { %v298_v32 = vadd.f32 %v297_v30, %v295_v31 }
 0x1dd   :  { %300 = vst.msk [vmem:[%s446_s3] sm:$0x3] %vm299_vm9, %v298_v32 }
 0x1de   :  { %305 = vsyncpa [#allocation4], 1 }

</bundles_post_ra>
